<compile_context>
chip_gen: v5e
topology: v5e:2x2
jax: 0.10.0
libtpu: 0.0.40
codegen_flags: <defaults>
</compile_context>

<pallas_src>
import functools
from typing import NamedTuple

import jax
import jax.numpy as jnp
from jax.experimental import pallas as pl
from jax.experimental.pallas import tpu as pltpu

_SUBLANE = 16       # bf16 sublane packing: batch tiles padded to a multiple of this
_LANE_MIN = 128     # minimum lane multiple (v5e MXU native)


def _round_up(x, m):
    return (x + m - 1) // m * m


def _cdiv(a, b):
    return -(-a // b)


def _lane_multiple():
    """256 on v6e/v7x (2x 256x256 MXU), 128 on v5e / unknown."""
    try:
        kind = jax.devices()[0].device_kind.lower()
    except Exception:
        return _LANE_MIN
    return 256 if any(t in kind for t in ("v6", "v7", "7x")) else _LANE_MIN


def _vmem_budget_bytes():
    """Usable per-core VMEM, with headroom left for compiler scratch."""
    try:
        cap = int(pltpu.get_tpu_info().vmem_capacity_bytes)
    except Exception:
        cap = 64 << 20          # conservative (v7x per-TC VMEM)
    return max(int(cap * 0.85), 32 << 20)


def _pick_tile(total, target, mult):
    """Largest multiple of `mult` that divides `total` and is <= target."""
    t = max(mult, min(total, (target // mult) * mult))
    while total % t != 0:
        t -= mult
    return t


# --------------------------------------------------------------------------- #
# Kernels
# --------------------------------------------------------------------------- #
def _fused_ffnn_kernel(*refs):
    """refs = (x_ref, w0, b0, w1, b1, ..., o_ref); all weights VMEM-resident.

    The whole layer stack runs inside one kernel invocation (unrolled Python
    loop): activations never leave VMEM between layers. Matmuls hit the MXU in
    bf16 with f32 accumulation; bias + ReLU run in f32 on the VPU.
    """
    num_layers = (len(refs) - 2) // 2
    x_ref, o_ref = refs[0], refs[-1]
    h = x_ref[...]                                              # bf16 tile
    for i in range(num_layers):                                 # unrolled
        w = refs[1 + 2 * i][...]                                # (in_p, out_p) bf16
        b = refs[2 + 2 * i][...]                                # (1,   out_p)  f32
        y = jnp.dot(h, w, preferred_element_type=jnp.float32)   # MXU, f32 acc
        y = jnp.maximum(y + b, 0.0)                             # ReLU after every layer
        h = y.astype(jnp.bfloat16) if i + 1 < num_layers else y
    o_ref[...] = h.astype(o_ref.dtype)                          # lane-dense store


def _linear_relu_kernel(x_ref, w_ref, b_ref, o_ref, acc_ref):
    """Streamed single layer: K-tiled matmul with f32 accumulator, bias+ReLU epilogue."""
    @pl.when(pl.program_id(2) == 0)
    def _():
        acc_ref[...] = jnp.zeros_like(acc_ref)

    acc_ref[...] += jnp.dot(x_ref[...], w_ref[...],
                            preferred_element_type=jnp.float32)

    @pl.when(pl.program_id(2) == pl.num_programs(2) - 1)
    def _():
        o_ref[...] = jnp.maximum(acc_ref[...] + b_ref[...], 0.0).astype(o_ref.dtype)


# --------------------------------------------------------------------------- #
# pallas_call wrappers
# --------------------------------------------------------------------------- #
def _resident_spec(shape):
    """Spec for a grid-invariant operand: constant index_map, single-buffered."""
    if hasattr(pl, "Buffered"):
        try:
            return pl.BlockSpec(shape, lambda i: (0, 0), pipeline_mode=pl.Buffered(1))
        except TypeError:
            pass
    return pl.BlockSpec(shape, lambda i: (0, 0))


def _fused_resident_call(x_p, flat_wb, tb, out_p, footprint, budget):
    B_p, in_p = x_p.shape
    in_specs = [pl.BlockSpec((tb, in_p), lambda i: (i, 0))]
    for a in flat_wb:
        in_specs.append(_resident_spec(a.shape))
    vmem_limit = int(min(budget, max(footprint + (8 << 20), 32 << 20)))
    return pl.pallas_call(
        _fused_ffnn_kernel,
        out_shape=jax.ShapeDtypeStruct((B_p, out_p), jnp.float32),
        grid=(B_p // tb,),
        in_specs=in_specs,
        out_specs=pl.BlockSpec((tb, out_p), lambda i: (i, 0)),
        compiler_params=pltpu.CompilerParams(
            dimension_semantics=("parallel",),      # batch axis -> megacore split
            vmem_limit_bytes=vmem_limit,
        ),
    )(x_p, *flat_wb)


def _streaming_layer_call(h_p, w_p, b_p, tb, out_dtype, budget):
    B_p, K_p = h_p.shape
    N_p = w_p.shape[1]
    tn = _pick_tile(N_p, 512, _LANE_MIN)
    tk = _pick_tile(K_p, 512, _LANE_MIN)
    out_isize = jnp.dtype(out_dtype).itemsize
    footprint = (2 * tb * tk * 2 + 2 * tk * tn * 2 + 2 * tn * 4
                 + 2 * tb * tn * out_isize + tb * tn * 4)
    vmem_limit = int(min(budget, max(footprint + (8 << 20), 32 << 20)))
    return pl.pallas_call(
        _linear_relu_kernel,
        out_shape=jax.ShapeDtypeStruct((B_p, N_p), out_dtype),
        grid=(B_p // tb, N_p // tn, K_p // tk),
        in_specs=[
            pl.BlockSpec((tb, tk), lambda i, j, k: (i, k)),
            pl.BlockSpec((tk, tn), lambda i, j, k: (k, j)),
            pl.BlockSpec((1, tn), lambda i, j, k: (0, j)),
        ],
        out_specs=pl.BlockSpec((tb, tn), lambda i, j, k: (i, j)),
        scratch_shapes=[pltpu.VMEM((tb, tn), jnp.float32)],
        compiler_params=pltpu.CompilerParams(
            dimension_semantics=("parallel", "parallel", "arbitrary"),
            vmem_limit_bytes=vmem_limit,
        ),
    )(h_p, w_p, b_p)


# --------------------------------------------------------------------------- #
# Forward
# --------------------------------------------------------------------------- #
@functools.partial(jax.jit,
                   static_argnames=("out_features", "batch_tile", "force_streaming"))
def _ffnn_forward_impl(x, flat_wb, *, out_features, batch_tile, force_streaming):
    B, in_features = x.shape
    num_layers = len(flat_wb) // 2
    ws = [flat_wb[2 * i] for i in range(num_layers)]
    bs = [flat_wb[2 * i + 1] for i in range(num_layers)]
    in_p = ws[0].shape[0]
    out_p = ws[-1].shape[1]
    max_feat_p = max([in_p] + [w.shape[1] for w in ws])

    # Balanced batch tile (spread pad waste over tiles; multiple of bf16 sublane).
    tb = _round_up(_cdiv(B, max(1, _cdiv(B, batch_tile))), _SUBLANE)
    tb = min(tb, _round_up(B, _SUBLANE))

    # Honest VMEM accounting: 1x resident weights (single-buffered), double-
    # buffered x/out tiles, intermediate f32+bf16 activation temporaries.
    budget = _vmem_budget_bytes()
    wb_bytes = sum(int(a.size) * a.dtype.itemsize for a in flat_wb)

    def act_bytes(t):
        io = 2 * t * in_p * 2 + 2 * t * out_p * 4
        tmp = 2 * t * max_feat_p * (4 + 2)
        return io + tmp

    while tb > _SUBLANE and wb_bytes + act_bytes(tb) > budget:
        tb = _round_up(tb // 2, _SUBLANE)

    resident_fits = (wb_bytes + act_bytes(tb) <= budget) and not force_streaming

    B_p = _round_up(B, tb)
    x_p = jnp.pad(x, ((0, B_p - B), (0, in_p - in_features))).astype(jnp.bfloat16)

    if resident_fits:
        out_padded = _fused_resident_call(
            x_p, flat_wb, tb, out_p, wb_bytes + act_bytes(tb), budget)
    else:
        # Weight-streaming fallback: one pallas_call per layer; activations stay
        # bf16 in HBM between layers while weights stream through BlockSpecs,
        # keeping the kernel MXU-bound instead of spill-bound when weights
        # exceed VMEM (e.g. hidden=4096x3 on v7x's 64 MiB per-TC VMEM).
        # TODO(synk): fp8 resident weights (+per-channel scales folded into the
        # f32 epilogue) would halve resident VMEM / weight HBM traffic on v7x.
        h = x_p
        for li in range(num_layers):
            out_dtype = jnp.float32 if li == num_layers - 1 else jnp.bfloat16
            h = _streaming_layer_call(h, ws[li], bs[li], tb, out_dtype, budget)
        out_padded = h

    return out_padded[:B, :out_features]


class PreparedFFNN(NamedTuple):
    flat_wb: tuple        # (w0_p, b0_p, w1_p, b1_p, ...) padded bf16 / f32
    in_features: int
    out_features: int


def prepare_ffnn_params(params, lane=None):
    """Pad (lane-dense) + bf16-cast the f32 params ONCE, hoisted out of forward.

    Zero-padded weight rows/cols and zero biases combined with ReLU(0)=0 cannot
    leak into the real outputs.
    """
    lane = _lane_multiple() if lane is None else lane
    in_features = params[0][0].shape[0]
    out_features = params[-1][0].shape[1]
    prev = _round_up(in_features, lane)
    flat = []
    for w, b in params:
        fi, fo = w.shape
        fo_p = _round_up(fo, lane)
        w_p = jnp.pad(w, ((0, prev - fi), (0, fo_p - fo))).astype(jnp.bfloat16)
        b_p = jnp.pad(jnp.reshape(b, (1, fo)), ((0, 0), (0, fo_p - fo))).astype(jnp.float32)
        flat += [w_p, b_p]
        prev = fo_p
    return PreparedFFNN(tuple(flat), in_features, out_features)


def ffnn_forward(x, prepared, *, batch_tile=512, force_streaming=False):
    """FFNN forward: ReLU(...ReLU(ReLU(x@W0+b0)@W1+b1)...@Wn+bn), output f32."""
    assert x.shape[-1] == prepared.in_features
    return _ffnn_forward_impl(x, prepared.flat_wb,
                              out_features=prepared.out_features,
                              batch_tile=batch_tile,
                              force_streaming=force_streaming)


def init_ffnn_params(key, input_size, hidden_size, output_size, num_layers):
    """PyTorch-style init: U(-1/sqrt(fan_in), 1/sqrt(fan_in)).

    Weights stored [in, out] (transpose of PyTorch's [out, in]) so y = x @ W + b.
    """
    params = []
    for i in range(num_layers):
        if i == 0:
            fan_in, fan_out = input_size, hidden_size
        elif i == num_layers - 1:
            fan_in, fan_out = hidden_size, output_size
        else:
            fan_in, fan_out = hidden_size, hidden_size
        key, kw, kb = jax.random.split(key, 3)
        bound = 1.0 / jnp.sqrt(jnp.asarray(fan_in, jnp.float32))
        w = jax.random.uniform(kw, (fan_in, fan_out), jnp.float32, -bound, bound)
        b = jax.random.uniform(kb, (1, fan_out), jnp.float32, -bound, bound)
        params.append((w, b))
    return params


if __name__ == "__main__":
    input_size, hidden_size, output_size, num_layers = 16, 32, 8, 3
    batch = 8

    key = jax.random.PRNGKey(0)
    key, kx = jax.random.split(key)
    x = jax.random.normal(kx, (batch, input_size), jnp.float32)
    params = init_ffnn_params(key, input_size, hidden_size, output_size, num_layers)

    prepared = prepare_ffnn_params(params)          # pad/cast once (not per call)

    out = jax.block_until_ready(ffnn_forward(x, prepared))
    assert out.shape == (batch, output_size)

    # Reference with identical numerics (bf16 operands, f32 accumulate).
    ref = x
    for w, b in params:
        ref = jnp.maximum(
            jnp.dot(ref.astype(jnp.bfloat16), w.astype(jnp.bfloat16),
                    preferred_element_type=jnp.float32) + b, 0.0)
    assert jnp.allclose(out, ref, atol=1e-3, rtol=1e-3), "mismatch vs bf16 reference"

    # Also exercise the weight-streaming fallback path (per-layer kernels).
    out_s = jax.block_until_ready(ffnn_forward(x, prepared, force_streaming=True))
    assert out_s.shape == (batch, output_size)
    assert jnp.allclose(out_s, ref, atol=1e-3, rtol=1e-3), "streaming path mismatch"

    # Loose check against the full-f32 PyTorch-semantics forward.
    ref32 = x
    for w, b in params:
        ref32 = jnp.maximum(ref32 @ w + b, 0.0)
    assert jnp.allclose(out, ref32, atol=5e-2, rtol=5e-2), "mismatch vs f32 reference"

    print("KERNEL_OK")
</pallas_src>

<mosaic_0001>
module attributes {stable_mosaic.version = 11 : i64} {
  func.func @_fused_ffnn_kernel(%arg0: i32, %arg1: memref<16x128xbf16, #tpu.memory_space<vmem>>, %arg2: memref<128x128xbf16, #tpu.memory_space<vmem>>, %arg3: memref<1x128xf32, #tpu.memory_space<vmem>>, %arg4: memref<128x128xbf16, #tpu.memory_space<vmem>>, %arg5: memref<1x128xf32, #tpu.memory_space<vmem>>, %arg6: memref<128x128xbf16, #tpu.memory_space<vmem>>, %arg7: memref<1x128xf32, #tpu.memory_space<vmem>>, %arg8: memref<16x128xf32, #tpu.memory_space<vmem>>) attributes {dimension_semantics = [#tpu.dimension_semantics<parallel>], iteration_bounds = array<i64: 1>, scalar_prefetch = 0 : i64, scratch_operands = 0 : i64, tpu.core_type = #tpu.core_type<tc>, window_params = [{transform_indices = @transform_0, window_bounds = array<i64: 16, 128>}, {pipeline_mode = #tpu.pipeline_mode<synchronous>, transform_indices = @transform_1, window_bounds = array<i64: 128, 128>}, {pipeline_mode = #tpu.pipeline_mode<synchronous>, transform_indices = @transform_2, window_bounds = array<i64: 1, 128>}, {pipeline_mode = #tpu.pipeline_mode<synchronous>, transform_indices = @transform_3, window_bounds = array<i64: 128, 128>}, {pipeline_mode = #tpu.pipeline_mode<synchronous>, transform_indices = @transform_4, window_bounds = array<i64: 1, 128>}, {pipeline_mode = #tpu.pipeline_mode<synchronous>, transform_indices = @transform_5, window_bounds = array<i64: 128, 128>}, {pipeline_mode = #tpu.pipeline_mode<synchronous>, transform_indices = @transform_6, window_bounds = array<i64: 1, 128>}, {transform_indices = @transform_7, window_bounds = array<i64: 16, 128>}]} {
    %c0 = arith.constant 0 : index
    %c0_0 = arith.constant 0 : index
    %0 = vector.load %arg1[%c0, %c0_0] : memref<16x128xbf16, #tpu.memory_space<vmem>>, vector<16x128xbf16>
    %c0_1 = arith.constant 0 : index
    %c0_2 = arith.constant 0 : index
    %1 = vector.load %arg2[%c0_1, %c0_2] : memref<128x128xbf16, #tpu.memory_space<vmem>>, vector<128x128xbf16>
    %c0_3 = arith.constant 0 : index
    %c0_4 = arith.constant 0 : index
    %2 = vector.load %arg3[%c0_3, %c0_4] : memref<1x128xf32, #tpu.memory_space<vmem>>, vector<1x128xf32>
    %cst = arith.constant dense<0.000000e+00> : vector<16x128xf32>
    %3 = tpu.matmul %0, %1, %cst {dimension_numbers = #tpu.dot_dimension_numbers<[1], [0], [0], [1], [0, 0, 1, 1], [], []>} : vector<16x128xbf16>, vector<128x128xbf16>, vector<16x128xf32> -> vector<16x128xf32>
    %4 = vector.broadcast %2 : vector<1x128xf32> to vector<16x128xf32>
    %5 = arith.addf %3, %4 : vector<16x128xf32>
    %cst_5 = arith.constant 0.000000e+00 : f32
    %6 = vector.broadcast %cst_5 : f32 to vector<16x128xf32>
    %7 = arith.maximumf %5, %6 : vector<16x128xf32>
    %8 = arith.truncf %7 : vector<16x128xf32> to vector<16x128xbf16>
    %c0_6 = arith.constant 0 : index
    %c0_7 = arith.constant 0 : index
    %9 = vector.load %arg4[%c0_6, %c0_7] : memref<128x128xbf16, #tpu.memory_space<vmem>>, vector<128x128xbf16>
    %c0_8 = arith.constant 0 : index
    %c0_9 = arith.constant 0 : index
    %10 = vector.load %arg5[%c0_8, %c0_9] : memref<1x128xf32, #tpu.memory_space<vmem>>, vector<1x128xf32>
    %cst_10 = arith.constant dense<0.000000e+00> : vector<16x128xf32>
    %11 = tpu.matmul %8, %9, %cst_10 {dimension_numbers = #tpu.dot_dimension_numbers<[1], [0], [0], [1], [0, 0, 1, 1], [], []>} : vector<16x128xbf16>, vector<128x128xbf16>, vector<16x128xf32> -> vector<16x128xf32>
    %12 = vector.broadcast %10 : vector<1x128xf32> to vector<16x128xf32>
    %13 = arith.addf %11, %12 : vector<16x128xf32>
    %cst_11 = arith.constant 0.000000e+00 : f32
    %14 = vector.broadcast %cst_11 : f32 to vector<16x128xf32>
    %15 = arith.maximumf %13, %14 : vector<16x128xf32>
    %16 = arith.truncf %15 : vector<16x128xf32> to vector<16x128xbf16>
    %c0_12 = arith.constant 0 : index
    %c0_13 = arith.constant 0 : index
    %17 = vector.load %arg6[%c0_12, %c0_13] : memref<128x128xbf16, #tpu.memory_space<vmem>>, vector<128x128xbf16>
    %c0_14 = arith.constant 0 : index
    %c0_15 = arith.constant 0 : index
    %18 = vector.load %arg7[%c0_14, %c0_15] : memref<1x128xf32, #tpu.memory_space<vmem>>, vector<1x128xf32>
    %cst_16 = arith.constant dense<0.000000e+00> : vector<16x128xf32>
    %19 = tpu.matmul %16, %17, %cst_16 {dimension_numbers = #tpu.dot_dimension_numbers<[1], [0], [0], [1], [0, 0, 1, 1], [], []>} : vector<16x128xbf16>, vector<128x128xbf16>, vector<16x128xf32> -> vector<16x128xf32>
    %20 = vector.broadcast %18 : vector<1x128xf32> to vector<16x128xf32>
    %21 = arith.addf %19, %20 : vector<16x128xf32>
    %cst_17 = arith.constant 0.000000e+00 : f32
    %22 = vector.broadcast %cst_17 : f32 to vector<16x128xf32>
    %23 = arith.maximumf %21, %22 : vector<16x128xf32>
    %c0_18 = arith.constant 0 : index
    %c0_19 = arith.constant 0 : index
    %24 = vector.load %arg8[%c0_18, %c0_19] : memref<16x128xf32, #tpu.memory_space<vmem>>, vector<16x128xf32>
    tpu.vector_store %arg8[%c0_18, %c0_19], %23 {strides = array<i32>} : memref<16x128xf32, #tpu.memory_space<vmem>>, vector<16x128xf32>,
    return
  }
  func.func @transform_0(%arg0: i32) -> (i32, i32) {
    %c0_i32 = arith.constant 0 : i32
    %c0_i32_0 = arith.constant 0 : i32
    return %arg0, %c0_i32 : i32, i32
  }
  func.func @transform_1(%arg0: i32) -> (i32, i32) {
    %c0_i32 = arith.constant 0 : i32
    %c0_i32_0 = arith.constant 0 : i32
    %c0_i32_1 = arith.constant 0 : i32
    return %c0_i32, %c0_i32_0 : i32, i32
  }
  func.func @transform_2(%arg0: i32) -> (i32, i32) {
    %c0_i32 = arith.constant 0 : i32
    %c0_i32_0 = arith.constant 0 : i32
    %c0_i32_1 = arith.constant 0 : i32
    return %c0_i32, %c0_i32_0 : i32, i32
  }
  func.func @transform_3(%arg0: i32) -> (i32, i32) {
    %c0_i32 = arith.constant 0 : i32
    %c0_i32_0 = arith.constant 0 : i32
    %c0_i32_1 = arith.constant 0 : i32
    return %c0_i32, %c0_i32_0 : i32, i32
  }
  func.func @transform_4(%arg0: i32) -> (i32, i32) {
    %c0_i32 = arith.constant 0 : i32
    %c0_i32_0 = arith.constant 0 : i32
    %c0_i32_1 = arith.constant 0 : i32
    return %c0_i32, %c0_i32_0 : i32, i32
  }
  func.func @transform_5(%arg0: i32) -> (i32, i32) {
    %c0_i32 = arith.constant 0 : i32
    %c0_i32_0 = arith.constant 0 : i32
    %c0_i32_1 = arith.constant 0 : i32
    return %c0_i32, %c0_i32_0 : i32, i32
  }
  func.func @transform_6(%arg0: i32) -> (i32, i32) {
    %c0_i32 = arith.constant 0 : i32
    %c0_i32_0 = arith.constant 0 : i32
    %c0_i32_1 = arith.constant 0 : i32
    return %c0_i32, %c0_i32_0 : i32, i32
  }
  func.func @transform_7(%arg0: i32) -> (i32, i32) {
    %c0_i32 = arith.constant 0 : i32
    %c0_i32_0 = arith.constant 0 : i32
    return %arg0, %c0_i32 : i32, i32
  }
}

</mosaic_0001>

<bundles_post_ra>
// kernel: _ffnn_forward_impl.1
= control target key start
LH: loop header
LB: loop body
LE: loop exit
PB: predicated region body
PF: predicated region fallthrough
CT: control target
= control target key end

     0   :  { %12 = vsyncpa [#allocation3], 0  ;;  %s624_s0 = inlined_call_operand.vmem [shape: bf16[16,128], index: 0, kind: input, shape index: {}]   ;;  %s625_s1 = inlined_call_operand.hbm [shape: bf16[128,128], index: 1, kind: input, shape index: {}]   ;;  %s626_s2 = inlined_call_operand.vmem [shape: f32[1,128], index: 2, kind: input, shape index: {}]   ;;  %s627_s3 = inlined_call_operand.hbm [shape: bf16[128,128], index: 3, kind: input, shape index: {}]   ;;  %s628_s4 = inlined_call_operand.vmem [shape: f32[1,128], index: 4, kind: input, shape index: {}]   ;;  %s629_s5 = inlined_call_operand.hbm [shape: bf16[128,128], index: 5, kind: input, shape index: {}]   ;;  %s630_s6 = inlined_call_operand.vmem [shape: f32[1,128], index: 6, kind: input, shape index: {}]   ;;  %s631_s7 = inlined_call_operand.vmem [shape: f32[16,128], index: 7, kind: output, shape index: {}]  }
   0x1   :  { %13 = vsyncpa [#allocation5], 0  ;;  %s35_s26 = sshll.u32 %s627_s3, 4  ;;  %s552_s27 = smov [#allocation4]   ;;  %s36_s26 = int_to_ptr.hbm [resolvable:$true] %s35_s26 }
   0x2   :  { %s37_s28 = sshll.u32 %s552_s27, 4  ;;  %s20_s8 = sshll.u32 %s625_s1, 4  ;;  %s38_s28 = int_to_ptr.vmem [resolvable:$true] %s37_s28  ;;  %s21_s8 = int_to_ptr.hbm [resolvable:$true] %s20_s8 }
   0x3   :  { %s553_s9 = smov 64   ;;  %s554_s10 = smov 4  }
   0x4   :  { %43 = dma.hbm_to_vmem [thread:$0]  %s36_s26, 1024, %s38_s28, [#allocation5], %s553_s9, %s553_s9, %s554_s10  }
   0x5   :  { %s555_s11 = smov [#allocation2]   ;;  %s50_s15 = sshll.u32 %s629_s5, 4  ;;  %s51_s15 = int_to_ptr.hbm [resolvable:$true] %s50_s15 }
   0x6   :  { %s22_s12 = sshll.u32 %s555_s11, 4  ;;  %s556_s3 = smov [#allocation6]   ;;  %s23_s12 = int_to_ptr.vmem [resolvable:$true] %s22_s12 }
   0x7   :  { %28 = dma.hbm_to_vmem [thread:$0]  %s21_s8, 1024, %s23_s12, [#allocation3], %s553_s9, %s553_s9, %s554_s10  }
   0x8   :  { %s52_s16 = sshll.u32 %s556_s3, 4  ;;  %s53_s16 = int_to_ptr.vmem [resolvable:$true] %s52_s16 }
   0x9   :  { %58 = dma.hbm_to_vmem [thread:$0]  %s51_s15, 1024, %s53_s16, [#allocation5], %s553_s9, %s553_s9, %s554_s10  }
   0xa   :  { %548 = dma.done.wait [#allocation3], 1024  }
   0xb   :  { %549 = vsyncadd [#allocation3], 4294966272 }
   0xc   :  { %550 = dma.done.wait [#allocation5], 2048  }
   0xd   :  { %551 = vsyncadd [#allocation5], 4294965248  ;;  %v451_v0 = vld [vmem:[#allocation2 + $0x38] sm:$0xff]  ;;  %v450_v1 = vld [vmem:[#allocation2 + $0x30] sm:$0xff] }
   0xe   :  { %149 = vmatpush.bf16.msra.mxu0 %v451_v0  ;;  %v459_v2 = vld [vmem:[#allocation4 + $0x38] sm:$0xff]  ;;  %v458_v3 = vld [vmem:[#allocation4 + $0x30] sm:$0xff]  ;;  %v449_v4 = vld [vmem:[#allocation2 + $0x28] sm:$0xff] }
   0xf   :  { %234 = vmatpush.bf16.msra.mxu1 %v459_v2  ;;  %v457_v5 = vld [vmem:[#allocation4 + $0x28] sm:$0xff]  ;;  %v448_v6 = vld [vmem:[#allocation2 + $0x20] sm:$0xff]  ;;  %v447_v8 = vld [vmem:[#allocation2 + $0x18] sm:$0xff] }
  0x10   :  { %v456_v7 = vld [vmem:[#allocation4 + $0x20] sm:$0xff]  ;;  %v446_v9 = vld [vmem:[#allocation2 + $0x10] sm:$0xff]  ;;  %v445_v10 = vld [vmem:[#allocation2 + $0x8] sm:$0xff] }
  0x11   :  { %v444_v11 = vld [vmem:[#allocation2] sm:$0xff]  ;;  %v455_v13 = vld [vmem:[#allocation4 + $0x18] sm:$0xff]  ;;  %v454_v14 = vld [vmem:[#allocation4 + $0x10] sm:$0xff] }
  0x12   :  { %150 = vmatpush.bf16.msra.mxu0 %v450_v1  ;;  %v443_v12 = vld [vmem:[%s624_s0] sm:$0xff]  ;;  %v453_v15 = vld [vmem:[#allocation4 + $0x8] sm:$0xff]  ;;  %v467_v17 = vld [vmem:[#allocation6 + $0x38] sm:$0xff] }
  0x13   :  { %235 = vmatpush.bf16.msra.mxu1 %v458_v3  ;;  %v452_v16 = vld [vmem:[#allocation4] sm:$0xff]  ;;  %319 = vmatpush.bf16.msra.mxu2 %v467_v17  ;;  %v466_v18 = vld [vmem:[#allocation6 + $0x30] sm:$0xff]  ;;  %v465_v19 = vld [vmem:[#allocation6 + $0x28] sm:$0xff] }
  0x14   :  { %v464_v20 = vld [vmem:[#allocation6 + $0x20] sm:$0xff]  ;;  %v463_v29 = vld [vmem:[#allocation6 + $0x18] sm:$0xff]  ;;  %v462_v30 = vld [vmem:[#allocation6 + $0x10] sm:$0xff] }
  0x15   :  { %v473_v22 = vld [vmem:[%s626_s2] ss:$0 sm:$0xff]  ;;  %v461_v31 = vld [vmem:[#allocation6 + $0x8] sm:$0xff] }
  0x16   :  { %151 = vmatpush.bf16.msra.mxu0 %v449_v4  ;;  %v460_v32 = vld [vmem:[#allocation6] sm:$0xff] }
  0x17   :  { %236 = vmatpush.bf16.msra.mxu1 %v457_v5  ;;  %320 = vmatpush.bf16.msra.mxu2 %v466_v18  ;;  %v474_v34 = vld [vmem:[%s628_s4] ss:$0 sm:$0xff] }
  0x18   :  { %v475_v41 = vld [vmem:[%s630_s6] ss:$0 sm:$0xff] }
  0x1a   :  { %152 = vmatpush.bf16.msra.mxu0 %v448_v6 }
  0x1b   :  { %237 = vmatpush.bf16.msra.mxu1 %v456_v7  ;;  %321 = vmatpush.bf16.msra.mxu2 %v465_v19 }
  0x1e   :  { %153 = vmatpush.bf16.msra.mxu0 %v447_v8 }
  0x1f   :  { %238 = vmatpush.bf16.msra.mxu1 %v455_v13  ;;  %322 = vmatpush.bf16.msra.mxu2 %v464_v20 }
  0x22   :  { %154 = vmatpush.bf16.msra.mxu0 %v446_v9 }
  0x23   :  { %239 = vmatpush.bf16.msra.mxu1 %v454_v14  ;;  %323 = vmatpush.bf16.msra.mxu2 %v463_v29 }
  0x26   :  { %155 = vmatpush.bf16.msra.mxu0 %v445_v10 }
  0x27   :  { %240 = vmatpush.bf16.msra.mxu1 %v453_v15  ;;  %324 = vmatpush.bf16.msra.mxu2 %v462_v30 }
  0x2a   :  { %156 = vmatpush.bf16.msra.mxu0 %v444_v11 }
  0x2b   :  { %241 = vmatpush.bf16.msra.mxu1 %v452_v16  ;;  %325 = vmatpush.bf16.msra.mxu2 %v461_v31 }
  0x2d   :  { %157 = vmatmul.bf16.vlgmr.msra.gmra.mxu0 %v443_v12 }
  0x2f   :  { %326 = vmatpush.bf16.msra.mxu2 %v460_v32 }
  0xaa   :  { %v158_v21 = vpop.f32.mrf.mxu0 }
  0xab   :  { %v159_v23 = vadd.f32 %v473_v22, %v158_v21 }
  0xad   :  { %v163_v26 = vmax.f32 %v159_v23, 0.0 }
  0xb2   :  { %v160_v24 = vpop.f32.mrf.mxu0 }
  0xb3   :  { %v161_v25 = vadd.f32 %v473_v22, %v160_v24 }
  0xb5   :  { %v164_v27 = vmax.f32 %v161_v25, 0.0 }
  0xb7   :  { %v165_v28 = vpack.c.bf16 %v164_v27, %v163_v26 }
  0xb9   :  { %242 = vmatmul.bf16.vlgmr.msra.gmra.mxu1 %v165_v28 }
 0x136   :  { %v243_v33 = vpop.f32.mrf.mxu1 }
 0x137   :  { %v244_v35 = vadd.f32 %v474_v34, %v243_v33 }
 0x139   :  { %v248_v38 = vmax.f32 %v244_v35, 0.0 }
 0x13e   :  { %v245_v36 = vpop.f32.mrf.mxu1 }
 0x13f   :  { %v246_v37 = vadd.f32 %v474_v34, %v245_v36 }
 0x141   :  { %v249_v39 = vmax.f32 %v246_v37, 0.0 }
 0x143   :  { %v250_v40 = vpack.c.bf16 %v249_v39, %v248_v38 }
 0x145   :  { %327 = vmatmul.bf16.vlgmr.msra.gmra.mxu2 %v250_v40 }
 0x1c8   :  { %v328_v42 = vpop.f32.mrf.mxu2 }
 0x1c9   :  { %v329_v43 = vadd.f32 %v475_v41, %v328_v42 }
 0x1cb   :  { %v333_v44 = vmax.f32 %v329_v43, 0.0 }
 0x1cd   :  { %335 = vst [vmem:[%s631_s7] sm:$0xff] %v333_v44 }
 0x1d0   :  { %v330_v45 = vpop.f32.mrf.mxu2 }
 0x1d1   :  { %v331_v46 = vadd.f32 %v475_v41, %v330_v45 }
 0x1d3   :  { %v334_v47 = vmax.f32 %v331_v46, 0.0 }
 0x1d5   :  { %336 = vst [vmem:[%s631_s7 + $0x8] sm:$0xff] %v334_v47 }
 0x1d6   :  { %341 = vsyncpa [#allocation3], 1 }
 0x1d7   :  { %342 = vsyncpa [#allocation5], 1 }

</bundles_post_ra>
